<compile_context>
chip_gen: v5e
topology: v5e:2x2
jax: 0.10.0
libtpu: 0.0.40
codegen_flags: <defaults>
</compile_context>

<pallas_src>
import numpy as np
import jax
import jax.numpy as jnp
from jax.experimental import pallas as pl
from jax.experimental.pallas import tpu as pltpu


# ----------------------------------------------------------------------------
# Pallas kernel: batched linear solve via precomputed K^{-1}
#   u[n, :] = K^{-1} @ f[n, :]   ==>   U = F @ K^{-T}
# ----------------------------------------------------------------------------
def _solve_kernel(f_ref, kinv_t_ref, o_ref):
    # f_ref:      (TB, M)   tile of RHS vectors (streamed, f32 or bf16)
    # kinv_t_ref: (M, M)    K^{-T}, f32, resident across the whole grid
    # o_ref:      (TB, M)   tile of solutions, f32
    o_ref[...] = jnp.dot(
        f_ref[...].astype(jnp.float32),
        kinv_t_ref[...],
        preferred_element_type=jnp.float32,
    ).astype(o_ref.dtype)


def _round_up(x, m):
    return ((x + m - 1) // m) * m


def _choose_tile_b(n, sublane_align):
    """Pick the batch tile: big (amortizes ~0.35us/grid-step overhead, fills the
    MXU), but capped so the grid keeps >=2 steps when the batch allows it, so
    the 'parallel' batch axis can be sharded across v7x's 2 TensorCores."""
    target = 512
    half = pl.cdiv(n, 2)
    tile = min(target, _round_up(half, sublane_align))
    return max(tile, sublane_align)


def pallas_batched_solve(f, kinv_t, *, tile_b=None, stream_dtype=jnp.float32):
    """u[n] = kinv_t.T @ f[n] for every batch element n, on the MXU."""
    n, m = f.shape
    assert kinv_t.shape == (m, m)

    # bf16 operands pack two rows per sublane -> tile must be a multiple of 16.
    is_bf16 = jnp.dtype(stream_dtype) == jnp.dtype(jnp.bfloat16)
    sublane_align = 16 if is_bf16 else 8

    if tile_b is None:
        tile_b = _choose_tile_b(n, sublane_align)
    # Clamp to (padded) batch and sublane alignment.
    tile_b = min(tile_b, _round_up(n, sublane_align))
    tile_b = max(sublane_align, _round_up(tile_b, sublane_align))

    grid_b = pl.cdiv(n, tile_b)
    n_pad = grid_b * tile_b

    f_stream = f.astype(stream_dtype)
    if n_pad != n:
        # Pad the batch with zero RHS rows; the padded solutions are zero and
        # sliced off below.  This lets awkward batch sizes still use big tiles.
        f_stream = jnp.pad(f_stream, ((0, n_pad - n), (0, 0)))

    kinv_t = kinv_t.astype(jnp.float32)

    elem_in = jnp.dtype(stream_dtype).itemsize
    # VMEM footprint: f double-buffered, u (f32) double-buffered, K^{-T} single.
    vmem_bytes = 2 * tile_b * m * elem_in + 2 * tile_b * m * 4 + m * m * 4
    # Generous headroom, floored at the v5e scoped default, capped below v7x's
    # 64 MiB physical VMEM.
    vmem_limit = int(min(max(2 * vmem_bytes, 16 * 1024 * 1024), 48 * 1024 * 1024))

    cost = pl.CostEstimate(
        flops=2 * n_pad * m * m,
        transcendentals=0,
        bytes_accessed=n_pad * m * elem_in + m * m * 4 + n_pad * m * 4,
    )

    out = pl.pallas_call(
        _solve_kernel,
        out_shape=jax.ShapeDtypeStruct((n_pad, m), jnp.float32),
        grid_spec=pltpu.PrefetchScalarGridSpec(
            num_scalar_prefetch=0,
            grid=(grid_b,),
            in_specs=[
                # Streamed RHS tiles.
                pl.BlockSpec((tile_b, m), lambda i: (i, 0)),
                # K^{-T} is resident (constant block index): single-buffer it so
                # large M does not burn 2x M^2 f32 of VMEM on a block that never
                # changes.
                pl.BlockSpec((m, m), lambda i: (0, 0),
                             pipeline_mode=pl.Buffered(1)),
            ],
            out_specs=pl.BlockSpec((tile_b, m), lambda i: (i, 0)),
        ),
        compiler_params=pltpu.CompilerParams(
            dimension_semantics=("parallel",),
            vmem_limit_bytes=vmem_limit,
        ),
        cost_estimate=cost,
    )(f_stream, kinv_t)

    if n_pad != n:
        out = out[:n]
    return out


# ----------------------------------------------------------------------------
# Concrete FiredrakeModule analogue (JAX)
# ----------------------------------------------------------------------------
class Poisson1DFiredrakeModule:
    """Concrete FiredrakeModule: solves -u'' = f on [0,1], u(0)=u(1)=0.

    Mirrors FiredrakeModule.forward semantics: the batched input f of shape
    (N, M) is conceptually unstacked, `solve` is applied per element, and the
    results are stacked back to (N, M).  Here the per-element solve is a
    linear system K u = f, and the whole batch is fused into one Pallas
    matmul against the precomputed K^{-1}.
    """

    def __init__(self, n_dofs=128, stream_dtype=jnp.float32):
        self.n_dofs = n_dofs
        self.stream_dtype = stream_dtype
        h = 1.0 / (n_dofs + 1)
        # Stiffness matrix of the 1-D Laplacian (deterministic "parameters").
        main = 2.0 * np.ones(n_dofs)
        off = -1.0 * np.ones(n_dofs - 1)
        K = (np.diag(main) + np.diag(off, 1) + np.diag(off, -1)) / (h * h)
        self.K = jnp.asarray(K, dtype=jnp.float32)
        # Glue / parameter setup in plain JAX: precompute K^{-T} once (f64 for
        # the inversion, then cast; K is symmetric so .T is a safety no-op).
        kinv = np.linalg.inv(np.asarray(K, dtype=np.float64))
        self.kinv_t = jnp.asarray(kinv.T, dtype=jnp.float32)

    def input_templates(self):
        # Single input template: RHS vector of length n_dofs.
        return jnp.zeros((self.n_dofs,), dtype=jnp.float32)

    def solve_reference(self, f_batch):
        """Pure-JAX reference of the per-element PDE solve (for validation)."""
        return jax.vmap(lambda f: jnp.linalg.solve(self.K, f))(
            f_batch.astype(jnp.float32)
        )

    def forward(self, f_batch):
        """Batched forward pass: (N, M) -> (N, M), hot path in Pallas."""
        if f_batch.ndim != 2 or f_batch.shape[1] != self.n_dofs:
            raise ValueError(
                f"Expected input shape (N, {self.n_dofs}), got {f_batch.shape}"
            )
        return pallas_batched_solve(
            f_batch,
            self.kinv_t,
            tile_b=None,                  # auto: big, batch-dependent tile
            stream_dtype=self.stream_dtype,
        )

    __call__ = forward


# ----------------------------------------------------------------------------
if __name__ == "__main__":
    n_dofs = 128   # dofs per PDE solve (lane-aligned)
    batch = 12     # batch size N (deliberately not a multiple of 8: exercises
                   # the pad-to-tile path and yields a 2-step grid)

    module = Poisson1DFiredrakeModule(n_dofs=n_dofs)

    key = jax.random.PRNGKey(0)
    f_batch = jax.random.normal(key, (batch, n_dofs), dtype=jnp.float32)

    u = module(f_batch)
    u = jax.block_until_ready(u)

    # Validate against the pure-JAX per-element solve.
    u_ref = module.solve_reference(f_batch)
    rel_err = float(
        jnp.max(jnp.abs(u - u_ref)) / (jnp.max(jnp.abs(u_ref)) + 1e-12)
    )
    assert u.shape == (batch, n_dofs), f"bad output shape {u.shape}"
    assert rel_err < 1e-3, f"relative error too large: {rel_err}"

    print("KERNEL_OK")
</pallas_src>

<mosaic_0001>
module attributes {stable_mosaic.version = 11 : i64} {
  func.func @_solve_kernel(%arg0: i32, %arg1: memref<8x128xf32, #tpu.memory_space<vmem>>, %arg2: memref<128x128xf32, #tpu.memory_space<vmem>>, %arg3: memref<8x128xf32, #tpu.memory_space<vmem>>) attributes {dimension_semantics = [#tpu.dimension_semantics<parallel>], iteration_bounds = array<i64: 2>, scalar_prefetch = 0 : i64, scratch_operands = 0 : i64, tpu.core_type = #tpu.core_type<tc>, window_params = [{transform_indices = @transform_0, window_bounds = array<i64: 8, 128>}, {pipeline_mode = #tpu.pipeline_mode<synchronous>, transform_indices = @transform_1, window_bounds = array<i64: 128, 128>}, {transform_indices = @transform_2, window_bounds = array<i64: 8, 128>}]} {
    %c0 = arith.constant 0 : index
    %c0_0 = arith.constant 0 : index
    %0 = vector.load %arg1[%c0, %c0_0] : memref<8x128xf32, #tpu.memory_space<vmem>>, vector<8x128xf32>
    %c0_1 = arith.constant 0 : index
    %c0_2 = arith.constant 0 : index
    %1 = vector.load %arg2[%c0_1, %c0_2] : memref<128x128xf32, #tpu.memory_space<vmem>>, vector<128x128xf32>
    %cst = arith.constant dense<0.000000e+00> : vector<8x128xf32>
    %2 = tpu.matmul %0, %1, %cst {dimension_numbers = #tpu.dot_dimension_numbers<[1], [0], [0], [1], [0, 0, 1, 1], [], []>} : vector<8x128xf32>, vector<128x128xf32>, vector<8x128xf32> -> vector<8x128xf32>
    %c0_3 = arith.constant 0 : index
    %c0_4 = arith.constant 0 : index
    %3 = vector.load %arg3[%c0_3, %c0_4] : memref<8x128xf32, #tpu.memory_space<vmem>>, vector<8x128xf32>
    tpu.vector_store %arg3[%c0_3, %c0_4], %2 {strides = array<i32>} : memref<8x128xf32, #tpu.memory_space<vmem>>, vector<8x128xf32>,
    return
  }
  func.func @transform_0(%arg0: i32) -> (i32, i32) {
    %c0_i32 = arith.constant 0 : i32
    %c0_i32_0 = arith.constant 0 : i32
    return %arg0, %c0_i32 : i32, i32
  }
  func.func @transform_1(%arg0: i32) -> (i32, i32) {
    %c0_i32 = arith.constant 0 : i32
    %c0_i32_0 = arith.constant 0 : i32
    %c0_i32_1 = arith.constant 0 : i32
    return %c0_i32, %c0_i32_0 : i32, i32
  }
  func.func @transform_2(%arg0: i32) -> (i32, i32) {
    %c0_i32 = arith.constant 0 : i32
    %c0_i32_0 = arith.constant 0 : i32
    return %arg0, %c0_i32 : i32, i32
  }
}

</mosaic_0001>

<bundles_post_ra>
// kernel: tpu_custom_call.1
= control target key start
LH: loop header
LB: loop body
LE: loop exit
PB: predicated region body
PF: predicated region fallthrough
CT: control target
= control target key end

     0   :  { %7 = vsyncpa [#allocation3], 0  ;;  %s678_s0 = inlined_call_operand.hbm [shape: f32[16,128], index: 0, kind: input, shape index: {}]   ;;  %s679_s1 = inlined_call_operand.hbm [shape: f32[128,128], index: 1, kind: input, shape index: {}]   ;;  %s680_s2 = inlined_call_operand.hbm [shape: f32[16,128], index: 2, kind: output, shape index: {}]  }
   0x1   :  { %9 = vsyncpa [#allocation3 + $0x1], 0 }
   0x2   :  { %10 = vsyncpa [#allocation6], 0 }
   0x3   :  { %11 = vsyncpa [#allocation4], 0 }
   0x4   :  { %13 = vsyncpa [#allocation4 + $0x1], 0  ;;  %s535_s9 = smov 0   ;;  %s537_s10 = smov 0  }
   0x5   :  { %s539_s11 = smov 0   ;;  %s541_s12 = smov 0  }
   0x6 LB: > { %s108_s15 = sshll.u32 %s679_s1, 4  ;;  %s559_s16 = sadd.s32 4294967295, %s515_s12   ;;  %s515_s12 = sphi %s541_s12, %s690_s12   ;;  %s511_s11 = sphi %s539_s11, %s689_s11   ;;  %s507_s10 = sphi %s537_s10, %s688_s10   ;;  %s503_s9 = sphi %s535_s9, %s687_s9   ;;  %s109_s15 = int_to_ptr.hbm [resolvable:$true] %s108_s15 }
   0x7   : > { %p313_p0 = scmp.ge.s32.totalorder %s515_s12, 1  ;;  %p40_p1 = scmp.eq.s32.totalorder %s559_s16, 0 }
   0x8   : > { %p97_p2 = scmp.lt.s32.totalorder %s515_s12, 3  ;;  %s517_s18 = smov [#allocation5]  }
   0x9   : > { %s110_s19 = sshll.u32 %s517_s18, 4  ;;  %s518_s20 = smov 128   ;;  %s111_s19 = int_to_ptr.vmem [resolvable:$true] %s110_s19 }
   0xa   : > { %p564_p3 = pnand %p313_p0, %p97_p2  ;;  %s519_s21 = smov 8  }
   0xb   : > { %s312_s22 = sadd.s32 4294967294, %s515_s12   ;;  %s575_s23 = sadd.s32 1, %s515_s12  }
   0xc   : > { %p334_p4 = pneg %p564_p3  ;;  %s26_s24 = sadd.s32 1, %s511_s11 }
   0xd   : > { %s23_s25 = ssub.s32 %s515_s12, %s575_s23  ;;  %p33_p7 = scmp.ne.s32.totalorder %s511_s11, %s507_s10 }
   0xe   : > { %p335_p6 = pnand %p334_p4, %p40_p1  ;;  %p24_p8 = scmp.eq.s32.totalorder %s23_s25, 0 }
   0xf   : > { %p34_p9 = scmp.eq.s32.totalorder %s515_s12, 0  ;;  %p39_p10 = scmp.ne.s32.totalorder %s507_s10, %s503_s9 }
  0x10   : > { %337 = dma.hbm_to_vmem [thread:$0]  (!%p335_p6), %s109_s15, 2048, %s111_s19, [#allocation6], %s518_s20, %s518_s20, %s519_s21  }
  0x11   : > { %p84_p11 = scmp.eq.s32.totalorder %s559_s16, 1  ;;  %p591_p12 = por %p40_p1, %p39_p10 }
  0x12   : > { %s587_s26 = scalar_select %p24_p8, %s511_s11, %s26_s24  }
  0x13   : > { %p595_p13 = por %p84_p11, %p33_p7  ;;  %p90_p0 = scmp.eq.s32.totalorder %s312_s22, 1 }
  0x14   : > { %p35_p2 = por %p34_p9, %p33_p7  ;;  %s124_s29 = sand.u32 1, %s511_s11  }
  0x15   : > { %p600_p4 = por %p90_p0, %p39_p10  ;;  %p347_p6 = scmp.lt.s32.totalorder %s515_s12, 2 }
  0x16   : > { %s316_s3 = sshll.u32 %s124_s29, 3  ;;  %s317_s4 = sshll.u32 %s515_s12, 3 }
  0x17   : > { %s132_s7 = scalar_lea.hbm %s678_s0, %s317_s4  ;;  %s128_s13 = scalar_lea.vmem [#allocation2], %s316_s3 }
  0x18   : > { %s134_s8 = sshll.u32 %s132_s7, 4  ;;  %s136_s14 = sshll.u32 %s128_s13, 4  ;;  %s135_s8 = int_to_ptr.hbm [resolvable:$true] %s134_s8  ;;  %s137_s14 = int_to_ptr.vmem [resolvable:$true] %s136_s14 }
  0x19   : > { %p609_p8 = pnand %p347_p6, %p35_p2  ;;  %s125_s18 = scalar_lea.sflag [#allocation3], %s124_s29 }
  0x1a   : > { %s415_s19 = sshra.s32 %s135_s8, 4  ;;  %s422_s24 = scalar_lea.hbm %s678_s0, 16  ;;  %s416_s19 = int_to_ptr.hbm [resolvable:$true] %s415_s19 }
  0x1b   : > { %s417_s20 = scalar_lea.hbm %s416_s19, 8  ;;  %p419_p9 = pneg %p609_p8 }
  0x1c   : > { %p418_p7 = scmp.ne.s32.totalorder %s416_s19, %s417_s20  ;;  %p423_p0 = scmp.lt.s32.totalorder %s416_s19, %s678_s0 }
  0x1d   : > { %p424_p2 = scmp.lt.s32.totalorder %s422_s24, %s417_s20 }
  0x1e   : > { %p420_p10 = pnand %p419_p9, %p418_p7 }
  0x1f   : > { %p425_p6 = por %p424_p2, %p423_p0 }
  0x20   : > { %p421_p11 = pneg %p420_p10 }
  0x22   : > { %p426_p5 = pnand %p425_p6, %p421_p11 }
  0x24   : > { %429 = shalt.err (!%p426_p5)
}
  0x25   : > { %341 = dma.hbm_to_vmem [thread:$0]  (!%p609_p8), %s135_s8, 128, %s137_s14, %s125_s18  }
  0x26   : > { %145 = sbr.rel (%p564_p3) target bundleno = 207 (0xcf), region = 28  ;;  %s626_s29 = sand.u32 (!%p564_p3), 1, %s507_s10  }
  0x27   : > { %s319_s4 = sshll.u32 (!%p564_p3), %s626_s29, 3  ;;  %s148_s5 = scalar_lea.sflag (!%p564_p3), [#allocation3], %s626_s29 }
  0x28   : > { %s632_s6 = scalar_lea.vmem (!%p564_p3), [#allocation2], %s319_s4 }
  0x2b   : > { %490 = dma.done.wait (%p591_p12), %s148_s5, 128  }
  0x2c   : > { %492 = vsyncadd (%p591_p12), %s148_s5, 4294967168 }
  0x2d   : > { %494 = dma.done.wait (%p40_p1), [#allocation6], 2048  }
  0x2e   : > { %496 = vsyncadd (%p40_p1), [#allocation6], 4294965248  ;;  %v194_v0 = vld [vmem:[#allocation5 + $0x78] sm:$0xff]  ;;  %v193_v1 = vld [vmem:[#allocation5 + $0x70] sm:$0xff]  ;;  %s323_s17 = sshll.u32 %s559_s16, 3  ;;  %s177_s13 = scalar_lea.vmem [#allocation7], %s319_s4 }
  0x2f   : > { %195 = vmatpush.msra.mxu0 %v194_v0  ;;  %v192_v2 = vld [vmem:[#allocation5 + $0x68] sm:$0xff]  ;;  %v191_v3 = vld [vmem:[#allocation5 + $0x60] sm:$0xff]  ;;  %v190_v4 = vld [vmem:[#allocation5 + $0x58] sm:$0xff]  ;;  %s227_s8 = scalar_lea.hbm %s680_s2, %s323_s17  ;;  %s229_s14 = sshll.u32 %s177_s13, 4  ;;  %s230_s14 = int_to_ptr.vmem [resolvable:$true] %s229_s14 }
  0x30   : > { %v189_v5 = vld [vmem:[#allocation5 + $0x50] sm:$0xff]  ;;  %v188_v6 = vld [vmem:[#allocation5 + $0x48] sm:$0xff]  ;;  %v187_v7 = vld [vmem:[#allocation5 + $0x40] sm:$0xff]  ;;  %s231_s15 = sshll.u32 %s227_s8, 4  ;;  %s217_s18 = scalar_lea.sflag [#allocation4], %s626_s29  ;;  %s232_s15 = int_to_ptr.hbm [resolvable:$true] %s231_s15 }
  0x31   : > { %196 = vmatpush.msra.mxu0 %v193_v1  ;;  %v186_v8 = vld [vmem:[#allocation5 + $0x38] sm:$0xff]  ;;  %v185_v9 = vld [vmem:[#allocation5 + $0x30] sm:$0xff]  ;;  %v184_v10 = vld [vmem:[#allocation5 + $0x28] sm:$0xff]  ;;  %s459_s19 = sshra.s32 %s232_s15, 4  ;;  %s465_s22 = scalar_lea.hbm %s680_s2, 16  ;;  %s460_s19 = int_to_ptr.hbm [resolvable:$true] %s459_s19 }
  0x32   : > { %v183_v11 = vld [vmem:[#allocation5 + $0x20] sm:$0xff]  ;;  %v182_v12 = vld [vmem:[#allocation5 + $0x18] sm:$0xff]  ;;  %v181_v13 = vld [vmem:[#allocation5 + $0x10] sm:$0xff]  ;;  %s461_s20 = scalar_lea.hbm %s460_s19, 8  ;;  %p466_p12 = scmp.lt.s32.totalorder %s460_s19, %s680_s2 }
  0x33   : > { %197 = vmatpush.msra.mxu0 %v192_v2  ;;  %v180_v14 = vld [vmem:[#allocation5 + $0x8] sm:$0xff]  ;;  %v179_v15 = vld [vmem:[#allocation5] sm:$0xff]  ;;  %v178_v16 = vld [vmem:[%s632_s6] sm:$0xff]  ;;  %p462_p1 = scmp.ne.s32.totalorder %s460_s19, %s461_s20  ;;  %p467_p8 = scmp.lt.s32.totalorder %s465_s22, %s461_s20 }
  0x35   : > { %198 = vmatpush.msra.mxu0 %v191_v3  ;;  %p463_p3 = pnand %p462_p1, %p595_p13  ;;  %p468_p7 = por %p467_p8, %p466_p12 }
  0x37   : > { %199 = vmatpush.msra.mxu0 %v190_v4  ;;  %p464_p5 = pneg %p463_p3 }
  0x39   : > { %200 = vmatpush.msra.mxu0 %v189_v5  ;;  %p469_p9 = pnand %p468_p7, %p464_p5 }
  0x3b   : > { %201 = vmatpush.msra.mxu0 %v188_v6 }
  0x3d   : > { %202 = vmatpush.msra.mxu0 %v187_v7 }
  0x3f   : > { %203 = vmatpush.msra.mxu0 %v186_v8 }
  0x41   : > { %204 = vmatpush.msra.mxu0 %v185_v9 }
  0x43   : > { %205 = vmatpush.msra.mxu0 %v184_v10 }
  0x45   : > { %206 = vmatpush.msra.mxu0 %v183_v11 }
  0x47   : > { %207 = vmatpush.msra.mxu0 %v182_v12 }
  0x49   : > { %208 = vmatpush.msra.mxu0 %v181_v13 }
  0x4b   : > { %209 = vmatpush.msra.mxu0 %v180_v14 }
  0x4d   : > { %210 = vmatpush.msra.mxu0 %v179_v15 }
  0x4e   : > { %211 = vmatmul.f32.vlgmr.msra.gmra.mxu0 %v178_v16 }
  0xcb   : > { %v212_v17 = vpop.f32.mrf.mxu0 }
  0xcc   : > { %215 = vst [vmem:[%s177_s13] sm:$0xff] %v212_v17 }
  0xcd   : > { %472 = shalt.err (!%p469_p9)
}
  0xce   : > { %332 = dma.vmem_to_hbm [thread:$0]  (%p595_p13), %s230_s14, 128, %s232_s15, %s217_s18  }
  0xcf PF: > { %s243_s3 = sand.u32 1, %s503_s9   ;;  %p686_p10 = scmp.ge.s32.totalorder %s515_s12, 2 }
  0xd0   : > { %s244_s29 = scalar_lea.sflag [#allocation4], %s243_s3 }
  0xd1   : > { %p343_p11 = pnand %p686_p10, %p600_p4 }
  0xd3   : > { %p344_p0 = pneg %p343_p11 }
  0xd5   : > { %498 = dma.done.wait (%p344_p0), %s244_s29, 128  }
  0xd6   : > { %500 = vsyncadd (%p344_p0), %s244_s29, 4294967168  ;;  %p16_p2 = scmp.ge.s32.totalorder %s575_s23, 4   ;;  %s687_s9 = smov %s507_s10 }
  0xd7   : > { %s688_s10 = smov %s511_s11  ;;  %s689_s11 = smov %s587_s26 }
  0xd8   : > { %s690_s12 = smov %s575_s23  ;;  %18 = sbr.rel (!%p16_p2) target bundleno = 6 (0x6), region = 77 }
  0xdd   :  { %250 = vsyncpa [#allocation3], 1 }
  0xde   :  { %252 = vsyncpa [#allocation3 + $0x1], 1 }
  0xdf   :  { %253 = vsyncpa [#allocation6], 1 }
  0xe0   :  { %254 = vsyncpa [#allocation4], 1 }
  0xe1   :  { %256 = vsyncpa [#allocation4 + $0x1], 1 }

</bundles_post_ra>
